<compile_context>
chip_gen: v5e
topology: v5e:2x2
jax: 0.10.0
libtpu: 0.0.40
codegen_flags: <defaults>
</compile_context>

<pallas_src>
import functools
import math

import jax
import jax.numpy as jnp
from jax.experimental import pallas as pl
from jax.experimental.pallas import tpu as pltpu


# ----------------------------------------------------------------------------
# Small helpers
# ----------------------------------------------------------------------------
def _pick_tile(n, max_tile):
    for t in (512, 256, 128, 64, 32, 16, 8):
        if t <= max_tile and t <= n and n % t == 0:
            return t
    return n


def _heads_per_slab(num_heads, head_dim, target_cols=512):
    """Largest head-group whose column slab is <= target_cols (and divides nh)."""
    for hpg in range(num_heads, 0, -1):
        if num_heads % hpg == 0 and hpg * head_dim <= target_cols:
            return hpg
    return 1


def _round_up(x, m):
    return ((x + m - 1) // m) * m


def _block_vmem_bytes(shape, dtype):
    """Rough VMEM footprint of one block, with (sublane, lane) padding."""
    itemsize = jnp.dtype(dtype).itemsize
    dims = list(shape)
    if len(dims) >= 1:
        dims[-1] = _round_up(dims[-1], 128)
    if len(dims) >= 2:
        dims[-2] = _round_up(dims[-2], max(8, 32 // itemsize))
    n = 1
    for d in dims:
        n *= int(d)
    return n * itemsize


def _vmem_limit_bytes(double_buffered, live):
    """Computed VMEM ask: 2x each pipelined block + live intermediates + slack."""
    total = sum(2 * _block_vmem_bytes(s, d) for s, d in double_buffered)
    total += sum(_block_vmem_bytes(s, d) for s, d in live)
    total = int(total * 1.25) + (2 << 20)
    return int(max(8 << 20, min(total, 64 << 20)))


# ----------------------------------------------------------------------------
# Kernel 1: fused QKV projection -> head-major Q / K / V
# ----------------------------------------------------------------------------
def _qkv_proj_kernel(hid_ref, w_ref, b_ref, q_ref, k_ref, v_ref, *,
                     num_heads, head_dim, heads_per_slab):
    # hid_ref: (1, ts, H) compute dtype
    # w_ref:   (3, H, H)  input->output layout, Q slice pre-scaled by 1/sqrt(d)
    # b_ref:   (3, 1, H)  f32, Q slice pre-scaled
    # q/k/v_ref: (1, nh, ts, d) head-major outputs
    x = hid_ref[0]                                          # (ts, H)
    slab = heads_per_slab * head_dim
    n_slabs = num_heads // heads_per_slab
    outs = (q_ref, k_ref, v_ref)
    for g in range(3):                                      # static: Q, K, V
        for hg in range(n_slabs):                           # static head-group slabs
            lo = hg * slab
            # Bounded live (ts, slab) f32 accumulator: no (S, 3H) intermediate.
            acc = jnp.dot(x, w_ref[g, :, lo:lo + slab],
                          preferred_element_type=jnp.float32)
            acc = acc + b_ref[g, :, lo:lo + slab]
            acc = acc.astype(outs[g].dtype)
            for j in range(heads_per_slab):                 # head-major scatter (VMEM)
                outs[g][0, hg * heads_per_slab + j] = (
                    acc[:, j * head_dim:(j + 1) * head_dim])


# ----------------------------------------------------------------------------
# Kernel 2: scaled dot-product attention (Q pre-scaled, additive mask)
# ----------------------------------------------------------------------------
def _sdpa_kernel(q_ref, k_ref, v_ref, mask_ref, out_ref, *, num_heads):
    # q_ref:    (1, nh, tq, d)  pre-scaled queries
    # k_ref:    (1, nh, S, d)
    # v_ref:    (1, nh, S, d)
    # mask_ref: (1, 1, S) or (1, tq, S) additive attention bias (f32)
    # out_ref:  (1, tq, H)
    q = q_ref[0]                                            # (nh, tq, d)
    k = k_ref[0]                                            # (nh, S, d)
    v = v_ref[0]                                            # (nh, S, d)

    # Scores batched over heads, f32 accumulation on the MXU.
    s = jnp.einsum("hqd,hkd->hqk", q, k,
                   preferred_element_type=jnp.float32)      # (nh, tq, S)
    s = s + mask_ref[0]                                     # broadcast (1|tq, S)

    # Numerically-stable softmax in f32; normalization is DEFERRED to the
    # (nh, tq, d) output (far fewer VPU multiplies than scaling p).
    m = jnp.max(s, axis=-1, keepdims=True)
    p = jnp.exp(s - m)
    l = jnp.sum(p, axis=-1, keepdims=True)                  # (nh, tq, 1)

    o = jnp.einsum("hqk,hkd->hqd", p.astype(v.dtype), v,
                   preferred_element_type=jnp.float32)      # (nh, tq, d)
    o = o * pl.reciprocal(l, approx=True)                   # EUP reciprocal
    o = o.astype(out_ref.dtype)

    # Lane-dense epilogue: one (tq, H) slab, one wide store (no per-head
    # masked 64-lane stores).
    out_ref[0] = jnp.concatenate([o[h] for h in range(num_heads)], axis=-1)


# ----------------------------------------------------------------------------
# Parameter preparation (cacheable by the caller)
# ----------------------------------------------------------------------------
def prepare_qkv_params(qkv_weight, qkv_bias, num_attention_heads, compute_dtype):
    """Transpose torch (3H, H) weight to (3, H_in, H_out), fold 1/sqrt(d) into
    the Q slice, cast to the compute dtype.  Call once and reuse."""
    _, hidden = qkv_weight.shape
    head_dim = hidden // num_attention_heads
    scale = 1.0 / math.sqrt(head_dim)
    w3 = jnp.transpose(qkv_weight.reshape(3, hidden, hidden), (0, 2, 1))
    w3 = w3.at[0].multiply(scale).astype(compute_dtype)          # (3, H, H)
    b3 = qkv_bias.reshape(3, 1, hidden).astype(jnp.float32)
    b3 = b3.at[0].multiply(scale)                                # (3, 1, H) f32
    return w3, b3


# ----------------------------------------------------------------------------
# Wrapper
# ----------------------------------------------------------------------------
def bert_fused_sdpa(hidden_states, qkv_weight, qkv_bias, attention_mask,
                    num_attention_heads, *, q_tile=None, s_tile=None,
                    compute_dtype=None, prepared_params=None):
    """Pallas implementation of BertFusedSDPA.forward.

    hidden_states:  (B, S, H)
    qkv_weight:     (3H, H)   torch nn.Linear weight layout
    qkv_bias:       (3H,)
    attention_mask: additive float mask; (..., S) with B*S elements (broadcast
                    over query positions) or (..., S, S) with B*S*S elements.
    Returns (out, None) with out: (B, S, H).
    """
    B, S, H = hidden_states.shape
    nh = num_attention_heads
    d = H // nh
    out_dtype = hidden_states.dtype
    # Callers with f32 activations should pass compute_dtype=jnp.bfloat16 for
    # full MXU rate on v5e/v6e/v7x (accumulation/softmax stay f32).
    cdtype = jnp.dtype(compute_dtype) if compute_dtype is not None else jnp.dtype(out_dtype)

    if q_tile is None:
        q_tile = _pick_tile(S, 256)
    if s_tile is None:
        s_tile = _pick_tile(S, 256)
    n_q = S // q_tile
    n_s = S // s_tile

    if prepared_params is None:
        w3, b3 = prepare_qkv_params(qkv_weight, qkv_bias, nh, cdtype)
    else:
        w3, b3 = prepared_params

    hidden_c = hidden_states.astype(cdtype)
    hpg = _heads_per_slab(nh, d)

    # ---------------- Kernel 1: QKV projection -----------------------------
    proj_vmem = _vmem_limit_bytes(
        double_buffered=[((1, s_tile, H), cdtype),
                         ((3, H, H), cdtype),
                         ((3, 1, H), jnp.float32)]
                        + [((1, nh, s_tile, d), cdtype)] * 3,
        live=[((s_tile, hpg * d), jnp.float32)] * 2)

    proj_kernel = functools.partial(_qkv_proj_kernel, num_heads=nh,
                                    head_dim=d, heads_per_slab=hpg)
    qkv_struct = jax.ShapeDtypeStruct((B, nh, S, d), cdtype)
    q, k, v = pl.pallas_call(
        proj_kernel,
        out_shape=(qkv_struct, qkv_struct, qkv_struct),
        grid_spec=pltpu.PrefetchScalarGridSpec(
            num_scalar_prefetch=0,
            grid=(B, n_s),
            in_specs=[
                pl.BlockSpec((1, s_tile, H), lambda b, si: (b, si, 0)),
                # TODO(synk): grid-invariant weight/bias could be single-
                # buffered (pipeline_mode=pl.Buffered(1)) to reclaim VMEM.
                pl.BlockSpec((3, H, H), lambda b, si: (0, 0, 0)),
                pl.BlockSpec((3, 1, H), lambda b, si: (0, 0, 0)),
            ],
            out_specs=[pl.BlockSpec((1, nh, s_tile, d),
                                    lambda b, si: (b, 0, si, 0))] * 3,
        ),
        compiler_params=pltpu.CompilerParams(
            dimension_semantics=("parallel", "parallel"),
            vmem_limit_bytes=proj_vmem),
    )(hidden_c, w3, b3)

    # ---------------- Kernel 2: attention ----------------------------------
    # Mask branching mirrors the torch forward; the padding-mask case stays
    # (B, 1, S) and broadcasts inside the kernel (no (B, S, S) in HBM).
    if attention_mask.size < B * S * S:
        mask = attention_mask.reshape(B, 1, S).astype(jnp.float32)
        mask_block = (1, 1, S)
        mask_spec = pl.BlockSpec(mask_block, lambda b, qi: (b, 0, 0))
    else:
        mask = attention_mask.reshape(B, S, S).astype(jnp.float32)
        mask_block = (1, q_tile, S)
        mask_spec = pl.BlockSpec(mask_block, lambda b, qi: (b, qi, 0))

    attn_vmem = _vmem_limit_bytes(
        double_buffered=[((1, nh, q_tile, d), cdtype),
                         ((1, nh, S, d), cdtype),
                         ((1, nh, S, d), cdtype),
                         (mask_block, jnp.float32),
                         ((1, q_tile, H), out_dtype)],
        live=[((nh, q_tile, S), jnp.float32)] * 2
             + [((nh, q_tile, d), jnp.float32)])

    # TODO(synk): for very long S (>= ~2048) or f32 BERT-large, switch to a
    # KV-chunked (flash-style) inner loop instead of full-(S) K/V blocks.
    # TODO(synk): attention dropout (attention_probs_dropout_prob) is not
    # applied; this matches F.scaled_dot_product_attention in eval mode.
    attn_kernel = functools.partial(_sdpa_kernel, num_heads=nh)
    out = pl.pallas_call(
        attn_kernel,
        out_shape=jax.ShapeDtypeStruct((B, S, H), out_dtype),
        grid_spec=pltpu.PrefetchScalarGridSpec(
            num_scalar_prefetch=0,
            grid=(B, n_q),
            in_specs=[
                pl.BlockSpec((1, nh, q_tile, d), lambda b, qi: (b, 0, qi, 0)),
                pl.BlockSpec((1, nh, S, d), lambda b, qi: (b, 0, 0, 0)),
                pl.BlockSpec((1, nh, S, d), lambda b, qi: (b, 0, 0, 0)),
                mask_spec,
            ],
            out_specs=pl.BlockSpec((1, q_tile, H), lambda b, qi: (b, qi, 0)),
        ),
        compiler_params=pltpu.CompilerParams(
            dimension_semantics=("parallel", "parallel"),
            vmem_limit_bytes=attn_vmem),
    )(q, k, v, mask)
    return out, None


# ----------------------------------------------------------------------------
# Pure-JAX reference mirroring the PyTorch forward
# ----------------------------------------------------------------------------
def _reference(hidden_states, qkv_weight, qkv_bias, attention_mask, num_heads):
    B, S, H = hidden_states.shape
    d = H // num_heads
    x = hidden_states.astype(jnp.float32)
    qkv = x @ qkv_weight.astype(jnp.float32).T + qkv_bias.astype(jnp.float32)
    qkv = qkv.reshape(B, S, 3, num_heads, d)
    qkv = jnp.transpose(qkv, (0, 3, 2, 1, 4))                # (B, nh, 3, S, d)
    q, k, v = qkv[:, :, 0], qkv[:, :, 1], qkv[:, :, 2]       # (B, nh, S, d)
    if attention_mask.size < B * S * S:
        bias = jnp.broadcast_to(attention_mask.reshape(B, 1, S), (B, S, S))
    else:
        bias = attention_mask.reshape(B, S, S)
    bias = bias.astype(jnp.float32)[:, None, :, :]           # (B, 1, S, S)
    s = jnp.einsum("bhqd,bhkd->bhqk", q, k) / math.sqrt(d) + bias
    p = jax.nn.softmax(s, axis=-1)
    o = jnp.einsum("bhqk,bhkd->bhqd", p, v)                  # (B, nh, S, d)
    o = jnp.transpose(o, (0, 2, 1, 3)).reshape(B, S, H)
    return o


if __name__ == "__main__":
    # Small BERT-like config.
    B, S, H = 2, 8, 32
    num_attention_heads = 4

    key = jax.random.PRNGKey(0)
    k_x, k_w, k_b = jax.random.split(key, 3)

    hidden_states = jax.random.normal(k_x, (B, S, H), dtype=jnp.float32)
    qkv_weight = 0.02 * jax.random.normal(k_w, (3 * H, H), dtype=jnp.float32)
    qkv_bias = 0.01 * jax.random.normal(k_b, (3 * H,), dtype=jnp.float32)

    # BERT-style extended padding mask (B, 1, 1, S): 0 = keep, -1e9 = masked.
    # numel = B*S < B*S^2, exercising the broadcast branch of forward().
    pad = jnp.array([[0] * S, [0] * (S - 2) + [1] * 2], dtype=jnp.float32)
    attention_mask = (pad * -1e9).reshape(B, 1, 1, S)

    out, _ = bert_fused_sdpa(hidden_states, qkv_weight, qkv_bias,
                             attention_mask, num_attention_heads)
    out = jax.block_until_ready(out)

    ref = _reference(hidden_states, qkv_weight, qkv_bias, attention_mask,
                     num_attention_heads)
    assert out.shape == (B, S, H)
    # Tolerance accounts for the approximate EUP reciprocal in the softmax.
    assert jnp.allclose(out, ref, atol=2e-3, rtol=2e-3), "mismatch vs reference"
    print("KERNEL_OK")
</pallas_src>

<mosaic_0001>
module attributes {stable_mosaic.version = 11 : i64} {
  func.func @_qkv_proj_kernel(%arg0: i32, %arg1: i32, %arg2: memref<1x8x32xf32, #tpu.memory_space<vmem>>, %arg3: memref<3x32x32xf32, #tpu.memory_space<vmem>>, %arg4: memref<3x1x32xf32, #tpu.memory_space<vmem>>, %arg5: memref<1x4x8x8xf32, #tpu.memory_space<vmem>>, %arg6: memref<1x4x8x8xf32, #tpu.memory_space<vmem>>, %arg7: memref<1x4x8x8xf32, #tpu.memory_space<vmem>>) attributes {dimension_semantics = [#tpu.dimension_semantics<parallel>, #tpu.dimension_semantics<parallel>], iteration_bounds = array<i64: 2, 1>, scalar_prefetch = 0 : i64, scratch_operands = 0 : i64, tpu.core_type = #tpu.core_type<tc>, window_params = [{transform_indices = @transform_0, window_bounds = array<i64: 1, 8, 32>}, {pipeline_mode = #tpu.pipeline_mode<synchronous>, transform_indices = @transform_1, window_bounds = array<i64: 3, 32, 32>}, {pipeline_mode = #tpu.pipeline_mode<synchronous>, transform_indices = @transform_2, window_bounds = array<i64: 3, 1, 32>}, {transform_indices = @transform_3, window_bounds = array<i64: 1, 4, 8, 8>}, {transform_indices = @transform_4, window_bounds = array<i64: 1, 4, 8, 8>}, {transform_indices = @transform_5, window_bounds = array<i64: 1, 4, 8, 8>}]} {
    %c0 = arith.constant 0 : index
    %c0_0 = arith.constant 0 : index
    %c0_1 = arith.constant 0 : index
    %0 = vector.load %arg2[%c0, %c0_0, %c0_1] : memref<1x8x32xf32, #tpu.memory_space<vmem>>, vector<1x8x32xf32>
    %1 = vector.shape_cast %0 : vector<1x8x32xf32> to vector<8x32xf32>
    %c0_2 = arith.constant 0 : index
    %c0_3 = arith.constant 0 : index
    %c0_4 = arith.constant 0 : index
    %2 = vector.load %arg3[%c0_2, %c0_3, %c0_4] : memref<3x32x32xf32, #tpu.memory_space<vmem>>, vector<1x32x32xf32>
    %3 = vector.shape_cast %2 : vector<1x32x32xf32> to vector<32x32xf32>
    %cst = arith.constant dense<0.000000e+00> : vector<8x32xf32>
    %4 = tpu.matmul %1, %3, %cst {dimension_numbers = #tpu.dot_dimension_numbers<[1], [0], [0], [1], [0, 0, 1, 1], [], []>} : vector<8x32xf32>, vector<32x32xf32>, vector<8x32xf32> -> vector<8x32xf32>
    %c0_5 = arith.constant 0 : index
    %c0_6 = arith.constant 0 : index
    %c0_7 = arith.constant 0 : index
    %5 = vector.load %arg4[%c0_5, %c0_6, %c0_7] : memref<3x1x32xf32, #tpu.memory_space<vmem>>, vector<1x1x32xf32>
    %6 = vector.shape_cast %5 : vector<1x1x32xf32> to vector<1x32xf32>
    %7 = vector.broadcast %6 : vector<1x32xf32> to vector<8x32xf32>
    %8 = arith.addf %4, %7 : vector<8x32xf32>
    %9 = vector.extract_strided_slice %8 {offsets = [0, 0], sizes = [8, 8], strides = [1, 1]} : vector<8x32xf32> to vector<8x8xf32>
    %c0_8 = arith.constant 0 : index
    %c0_9 = arith.constant 0 : index
    %c0_10 = arith.constant 0 : index
    %c0_11 = arith.constant 0 : index
    %10 = vector.load %arg5[%c0_8, %c0_9, %c0_10, %c0_11] : memref<1x4x8x8xf32, #tpu.memory_space<vmem>>, vector<1x1x8x8xf32>
    %11 = vector.shape_cast %10 : vector<1x1x8x8xf32> to vector<8x8xf32>
    %12 = vector.shape_cast %9 : vector<8x8xf32> to vector<1x1x8x8xf32>
    tpu.vector_store %arg5[%c0_8, %c0_9, %c0_10, %c0_11], %12 {strides = array<i32>} : memref<1x4x8x8xf32, #tpu.memory_space<vmem>>, vector<1x1x8x8xf32>,
    %13 = vector.extract_strided_slice %8 {offsets = [0, 8], sizes = [8, 8], strides = [1, 1]} : vector<8x32xf32> to vector<8x8xf32>
    %c0_12 = arith.constant 0 : index
    %c1 = arith.constant 1 : index
    %c0_13 = arith.constant 0 : index
    %c0_14 = arith.constant 0 : index
    %14 = vector.load %arg5[%c0_12, %c1, %c0_13, %c0_14] : memref<1x4x8x8xf32, #tpu.memory_space<vmem>>, vector<1x1x8x8xf32>
    %15 = vector.shape_cast %14 : vector<1x1x8x8xf32> to vector<8x8xf32>
    %16 = vector.shape_cast %13 : vector<8x8xf32> to vector<1x1x8x8xf32>
    tpu.vector_store %arg5[%c0_12, %c1, %c0_13, %c0_14], %16 {strides = array<i32>} : memref<1x4x8x8xf32, #tpu.memory_space<vmem>>, vector<1x1x8x8xf32>,
    %17 = vector.extract_strided_slice %8 {offsets = [0, 16], sizes = [8, 8], strides = [1, 1]} : vector<8x32xf32> to vector<8x8xf32>
    %c0_15 = arith.constant 0 : index
    %c2 = arith.constant 2 : index
    %c0_16 = arith.constant 0 : index
    %c0_17 = arith.constant 0 : index
    %18 = vector.load %arg5[%c0_15, %c2, %c0_16, %c0_17] : memref<1x4x8x8xf32, #tpu.memory_space<vmem>>, vector<1x1x8x8xf32>
    %19 = vector.shape_cast %18 : vector<1x1x8x8xf32> to vector<8x8xf32>
    %20 = vector.shape_cast %17 : vector<8x8xf32> to vector<1x1x8x8xf32>
    tpu.vector_store %arg5[%c0_15, %c2, %c0_16, %c0_17], %20 {strides = array<i32>} : memref<1x4x8x8xf32, #tpu.memory_space<vmem>>, vector<1x1x8x8xf32>,
    %21 = vector.extract_strided_slice %8 {offsets = [0, 24], sizes = [8, 8], strides = [1, 1]} : vector<8x32xf32> to vector<8x8xf32>
    %c0_18 = arith.constant 0 : index
    %c3 = arith.constant 3 : index
    %c0_19 = arith.constant 0 : index
    %c0_20 = arith.constant 0 : index
    %22 = vector.load %arg5[%c0_18, %c3, %c0_19, %c0_20] : memref<1x4x8x8xf32, #tpu.memory_space<vmem>>, vector<1x1x8x8xf32>
    %23 = vector.shape_cast %22 : vector<1x1x8x8xf32> to vector<8x8xf32>
    %24 = vector.shape_cast %21 : vector<8x8xf32> to vector<1x1x8x8xf32>
    tpu.vector_store %arg5[%c0_18, %c3, %c0_19, %c0_20], %24 {strides = array<i32>} : memref<1x4x8x8xf32, #tpu.memory_space<vmem>>, vector<1x1x8x8xf32>,
    %c1_21 = arith.constant 1 : index
    %c0_22 = arith.constant 0 : index
    %c0_23 = arith.constant 0 : index
    %25 = vector.load %arg3[%c1_21, %c0_22, %c0_23] : memref<3x32x32xf32, #tpu.memory_space<vmem>>, vector<1x32x32xf32>
    %26 = vector.shape_cast %25 : vector<1x32x32xf32> to vector<32x32xf32>
    %cst_24 = arith.constant dense<0.000000e+00> : vector<8x32xf32>
    %27 = tpu.matmul %1, %26, %cst_24 {dimension_numbers = #tpu.dot_dimension_numbers<[1], [0], [0], [1], [0, 0, 1, 1], [], []>} : vector<8x32xf32>, vector<32x32xf32>, vector<8x32xf32> -> vector<8x32xf32>
    %c1_25 = arith.constant 1 : index
    %c0_26 = arith.constant 0 : index
    %c0_27 = arith.constant 0 : index
    %28 = vector.load %arg4[%c1_25, %c0_26, %c0_27] : memref<3x1x32xf32, #tpu.memory_space<vmem>>, vector<1x1x32xf32>
    %29 = vector.shape_cast %28 : vector<1x1x32xf32> to vector<1x32xf32>
    %30 = vector.broadcast %29 : vector<1x32xf32> to vector<8x32xf32>
    %31 = arith.addf %27, %30 : vector<8x32xf32>
    %32 = vector.extract_strided_slice %31 {offsets = [0, 0], sizes = [8, 8], strides = [1, 1]} : vector<8x32xf32> to vector<8x8xf32>
    %c0_28 = arith.constant 0 : index
    %c0_29 = arith.constant 0 : index
    %c0_30 = arith.constant 0 : index
    %c0_31 = arith.constant 0 : index
    %33 = vector.load %arg6[%c0_28, %c0_29, %c0_30, %c0_31] : memref<1x4x8x8xf32, #tpu.memory_space<vmem>>, vector<1x1x8x8xf32>
    %34 = vector.shape_cast %33 : vector<1x1x8x8xf32> to vector<8x8xf32>
    %35 = vector.shape_cast %32 : vector<8x8xf32> to vector<1x1x8x8xf32>
    tpu.vector_store %arg6[%c0_28, %c0_29, %c0_30, %c0_31], %35 {strides = array<i32>} : memref<1x4x8x8xf32, #tpu.memory_space<vmem>>, vector<1x1x8x8xf32>,
    %36 = vector.extract_strided_slice %31 {offsets = [0, 8], sizes = [8, 8], strides = [1, 1]} : vector<8x32xf32> to vector<8x8xf32>
    %c0_32 = arith.constant 0 : index
    %c1_33 = arith.constant 1 : index
    %c0_34 = arith.constant 0 : index
    %c0_35 = arith.constant 0 : index
    %37 = vector.load %arg6[%c0_32, %c1_33, %c0_34, %c0_35] : memref<1x4x8x8xf32, #tpu.memory_space<vmem>>, vector<1x1x8x8xf32>
    %38 = vector.shape_cast %37 : vector<1x1x8x8xf32> to vector<8x8xf32>
    %39 = vector.shape_cast %36 : vector<8x8xf32> to vector<1x1x8x8xf32>
    tpu.vector_store %arg6[%c0_32, %c1_33, %c0_34, %c0_35], %39 {strides = array<i32>} : memref<1x4x8x8xf32, #tpu.memory_space<vmem>>, vector<1x1x8x8xf32>,
    %40 = vector.extract_strided_slice %31 {offsets = [0, 16], sizes = [8, 8], strides = [1, 1]} : vector<8x32xf32> to vector<8x8xf32>
    %c0_36 = arith.constant 0 : index
    %c2_37 = arith.constant 2 : index
    %c0_38 = arith.constant 0 : index
    %c0_39 = arith.constant 0 : index
    %41 = vector.load %arg6[%c0_36, %c2_37, %c0_38, %c0_39] : memref<1x4x8x8xf32, #tpu.memory_space<vmem>>, vector<1x1x8x8xf32>
    %42 = vector.shape_cast %41 : vector<1x1x8x8xf32> to vector<8x8xf32>
    %43 = vector.shape_cast %40 : vector<8x8xf32> to vector<1x1x8x8xf32>
    tpu.vector_store %arg6[%c0_36, %c2_37, %c0_38, %c0_39], %43 {strides = array<i32>} : memref<1x4x8x8xf32, #tpu.memory_space<vmem>>, vector<1x1x8x8xf32>,
    %44 = vector.extract_strided_slice %31 {offsets = [0, 24], sizes = [8, 8], strides = [1, 1]} : vector<8x32xf32> to vector<8x8xf32>
    %c0_40 = arith.constant 0 : index
    %c3_41 = arith.constant 3 : index
    %c0_42 = arith.constant 0 : index
    %c0_43 = arith.constant 0 : index
    %45 = vector.load %arg6[%c0_40, %c3_41, %c0_42, %c0_43] : memref<1x4x8x8xf32, #tpu.memory_space<vmem>>, vector<1x1x8x8xf32>
    %46 = vector.shape_cast %45 : vector<1x1x8x8xf32> to vector<8x8xf32>
    %47 = vector.shape_cast %44 : vector<8x8xf32> to vector<1x1x8x8xf32>
    tpu.vector_store %arg6[%c0_40, %c3_41, %c0_42, %c0_43], %47 {strides = array<i32>} : memref<1x4x8x8xf32, #tpu.memory_space<vmem>>, vector<1x1x8x8xf32>,
    %c2_44 = arith.constant 2 : index
    %c0_45 = arith.constant 0 : index
    %c0_46 = arith.constant 0 : index
    %48 = vector.load %arg3[%c2_44, %c0_45, %c0_46] : memref<3x32x32xf32, #tpu.memory_space<vmem>>, vector<1x32x32xf32>
    %49 = vector.shape_cast %48 : vector<1x32x32xf32> to vector<32x32xf32>
    %cst_47 = arith.constant dense<0.000000e+00> : vector<8x32xf32>
    %50 = tpu.matmul %1, %49, %cst_47 {dimension_numbers = #tpu.dot_dimension_numbers<[1], [0], [0], [1], [0, 0, 1, 1], [], []>} : vector<8x32xf32>, vector<32x32xf32>, vector<8x32xf32> -> vector<8x32xf32>
    %c2_48 = arith.constant 2 : index
    %c0_49 = arith.constant 0 : index
    %c0_50 = arith.constant 0 : index
    %51 = vector.load %arg4[%c2_48, %c0_49, %c0_50] : memref<3x1x32xf32, #tpu.memory_space<vmem>>, vector<1x1x32xf32>
    %52 = vector.shape_cast %51 : vector<1x1x32xf32> to vector<1x32xf32>
    %53 = vector.broadcast %52 : vector<1x32xf32> to vector<8x32xf32>
    %54 = arith.addf %50, %53 : vector<8x32xf32>
    %55 = vector.extract_strided_slice %54 {offsets = [0, 0], sizes = [8, 8], strides = [1, 1]} : vector<8x32xf32> to vector<8x8xf32>
    %c0_51 = arith.constant 0 : index
    %c0_52 = arith.constant 0 : index
    %c0_53 = arith.constant 0 : index
    %c0_54 = arith.constant 0 : index
    %56 = vector.load %arg7[%c0_51, %c0_52, %c0_53, %c0_54] : memref<1x4x8x8xf32, #tpu.memory_space<vmem>>, vector<1x1x8x8xf32>
    %57 = vector.shape_cast %56 : vector<1x1x8x8xf32> to vector<8x8xf32>
    %58 = vector.shape_cast %55 : vector<8x8xf32> to vector<1x1x8x8xf32>
    tpu.vector_store %arg7[%c0_51, %c0_52, %c0_53, %c0_54], %58 {strides = array<i32>} : memref<1x4x8x8xf32, #tpu.memory_space<vmem>>, vector<1x1x8x8xf32>,
    %59 = vector.extract_strided_slice %54 {offsets = [0, 8], sizes = [8, 8], strides = [1, 1]} : vector<8x32xf32> to vector<8x8xf32>
    %c0_55 = arith.constant 0 : index
    %c1_56 = arith.constant 1 : index
    %c0_57 = arith.constant 0 : index
    %c0_58 = arith.constant 0 : index
    %60 = vector.load %arg7[%c0_55, %c1_56, %c0_57, %c0_58] : memref<1x4x8x8xf32, #tpu.memory_space<vmem>>, vector<1x1x8x8xf32>
    %61 = vector.shape_cast %60 : vector<1x1x8x8xf32> to vector<8x8xf32>
    %62 = vector.shape_cast %59 : vector<8x8xf32> to vector<1x1x8x8xf32>
    tpu.vector_store %arg7[%c0_55, %c1_56, %c0_57, %c0_58], %62 {strides = array<i32>} : memref<1x4x8x8xf32, #tpu.memory_space<vmem>>, vector<1x1x8x8xf32>,
    %63 = vector.extract_strided_slice %54 {offsets = [0, 16], sizes = [8, 8], strides = [1, 1]} : vector<8x32xf32> to vector<8x8xf32>
    %c0_59 = arith.constant 0 : index
    %c2_60 = arith.constant 2 : index
    %c0_61 = arith.constant 0 : index
    %c0_62 = arith.constant 0 : index
    %64 = vector.load %arg7[%c0_59, %c2_60, %c0_61, %c0_62] : memref<1x4x8x8xf32, #tpu.memory_space<vmem>>, vector<1x1x8x8xf32>
    %65 = vector.shape_cast %64 : vector<1x1x8x8xf32> to vector<8x8xf32>
    %66 = vector.shape_cast %63 : vector<8x8xf32> to vector<1x1x8x8xf32>
    tpu.vector_store %arg7[%c0_59, %c2_60, %c0_61, %c0_62], %66 {strides = array<i32>} : memref<1x4x8x8xf32, #tpu.memory_space<vmem>>, vector<1x1x8x8xf32>,
    %67 = vector.extract_strided_slice %54 {offsets = [0, 24], sizes = [8, 8], strides = [1, 1]} : vector<8x32xf32> to vector<8x8xf32>
    %c0_63 = arith.constant 0 : index
    %c3_64 = arith.constant 3 : index
    %c0_65 = arith.constant 0 : index
    %c0_66 = arith.constant 0 : index
    %68 = vector.load %arg7[%c0_63, %c3_64, %c0_65, %c0_66] : memref<1x4x8x8xf32, #tpu.memory_space<vmem>>, vector<1x1x8x8xf32>
    %69 = vector.shape_cast %68 : vector<1x1x8x8xf32> to vector<8x8xf32>
    %70 = vector.shape_cast %67 : vector<8x8xf32> to vector<1x1x8x8xf32>
    tpu.vector_store %arg7[%c0_63, %c3_64, %c0_65, %c0_66], %70 {strides = array<i32>} : memref<1x4x8x8xf32, #tpu.memory_space<vmem>>, vector<1x1x8x8xf32>,
    return
  }
  func.func @transform_0(%arg0: i32, %arg1: i32) -> (i32, i32, i32) {
    %c0_i32 = arith.constant 0 : i32
    %c0_i32_0 = arith.constant 0 : i32
    return %arg0, %arg1, %c0_i32 : i32, i32, i32
  }
  func.func @transform_1(%arg0: i32, %arg1: i32) -> (i32, i32, i32) {
    %c0_i32 = arith.constant 0 : i32
    %c0_i32_0 = arith.constant 0 : i32
    %c0_i32_1 = arith.constant 0 : i32
    %c0_i32_2 = arith.constant 0 : i32
    return %c0_i32, %c0_i32_0, %c0_i32_1 : i32, i32, i32
  }
  func.func @transform_2(%arg0: i32, %arg1: i32) -> (i32, i32, i32) {
    %c0_i32 = arith.constant 0 : i32
    %c0_i32_0 = arith.constant 0 : i32
    %c0_i32_1 = arith.constant 0 : i32
    %c0_i32_2 = arith.constant 0 : i32
    return %c0_i32, %c0_i32_0, %c0_i32_1 : i32, i32, i32
  }
  func.func @transform_3(%arg0: i32, %arg1: i32) -> (i32, i32, i32, i32) {
    %c0_i32 = arith.constant 0 : i32
    %c0_i32_0 = arith.constant 0 : i32
    %c0_i32_1 = arith.constant 0 : i32
    return %arg0, %c0_i32, %arg1, %c0_i32_0 : i32, i32, i32, i32
  }
  func.func @transform_4(%arg0: i32, %arg1: i32) -> (i32, i32, i32, i32) {
    %c0_i32 = arith.constant 0 : i32
    %c0_i32_0 = arith.constant 0 : i32
    %c0_i32_1 = arith.constant 0 : i32
    return %arg0, %c0_i32, %arg1, %c0_i32_0 : i32, i32, i32, i32
  }
  func.func @transform_5(%arg0: i32, %arg1: i32) -> (i32, i32, i32, i32) {
    %c0_i32 = arith.constant 0 : i32
    %c0_i32_0 = arith.constant 0 : i32
    %c0_i32_1 = arith.constant 0 : i32
    return %arg0, %c0_i32, %arg1, %c0_i32_0 : i32, i32, i32, i32
  }
}

</mosaic_0001>

<bundles_post_ra>
// kernel: tpu_custom_call.1
= control target key start
LH: loop header
LB: loop body
LE: loop exit
PB: predicated region body
PF: predicated region fallthrough
CT: control target
= control target key end

     0   :  { %s1358_s0 = inlined_call_operand.hbm [shape: f32[2,8,32], index: 0, kind: input, shape index: {}]   ;;  %s1359_s1 = inlined_call_operand.hbm [shape: f32[3,32,32], index: 1, kind: input, shape index: {}]   ;;  %s1360_s2 = inlined_call_operand.hbm [shape: f32[3,1,32], index: 2, kind: input, shape index: {}]   ;;  %s1361_s3 = inlined_call_operand.hbm [shape: f32[2,4,8,8], index: 3, kind: output, shape index: {0}]   ;;  %s1362_s4 = inlined_call_operand.hbm [shape: f32[2,4,8,8], index: 4, kind: output, shape index: {1}]   ;;  %s1363_s5 = inlined_call_operand.hbm [shape: f32[2,4,8,8], index: 5, kind: output, shape index: {2}]  }
   0x1   :  { %1367 = sst [smem:[#allocation17_spill]] %s1358_s0 }
   0x2   :  { %1368 = sst [smem:[#allocation18_spill]] %s1359_s1 }
   0x3   :  { %1369 = sst [smem:[#allocation19_spill]] %s1360_s2 }
   0x4   :  { %11 = vsyncpa [#allocation3], 0 }
   0x5   :  { %13 = vsyncpa [#allocation3 + $0x1], 0 }
   0x6   :  { %14 = vsyncpa [#allocation6], 0 }
   0x7   :  { %15 = vsyncpa [#allocation4], 0 }
   0x8   :  { %17 = vsyncpa [#allocation4 + $0x1], 0 }
   0x9   :  { %18 = vsyncpa [#allocation10], 0 }
   0xa   :  { %20 = vsyncpa [#allocation10 + $0x1], 0  ;;  %s1117_s18 = smov 0   ;;  %s1119_s19 = smov 0  }
   0xb   :  { %s1121_s20 = smov 0   ;;  %s1123_s21 = smov 0  }
   0xc   :  { %s1125_s22 = smov 0   ;;  %s1127_s23 = smov 0  }
   0xd LB: > { %s1148_s24 = sadd.s32 4294967295, %s1074_s23   ;;  %p694_p0 = scmp.ge.s32.totalorder %s1074_s23, 1  ;;  %s1074_s23 = sphi %s1127_s23, %s26_s23   ;;  %s1070_s22 = sphi %s1125_s22, %s1387_s22   ;;  %s1066_s21 = sphi %s1123_s21, %s1386_s21   ;;  %s1062_s20 = sphi %s1121_s20, %s1385_s20   ;;  %s1058_s19 = sphi %s1119_s19, %s1384_s19   ;;  %s1054_s18 = sphi %s1117_s18, %s1383_s18  }
   0xe   : > { %p61_p1 = scmp.eq.s32.totalorder %s1148_s24, 0  ;;  %p197_p2 = scmp.lt.s32.totalorder %s1074_s23, 3 }
   0xf   : > { %s1370_s1 = sld [smem:[#allocation18_spill]]  ;;  %s1076_s29 = smov [#allocation5]  }
  0x10   : > { %p1156_p3 = pnand %p694_p0, %p197_p2  ;;  %s210_s30 = sshll.u32 %s1076_s29, 4  ;;  %s211_s30 = int_to_ptr.vmem [resolvable:$true] %s210_s30 }
  0x11   : > { %p697_p6 = scmp.ge.s32.totalorder %s1074_s23, 2  ;;  %s1372_s2 = sld [smem:[#allocation19_spill]] }
  0x12   : > { %p749_p4 = pneg %p1156_p3  ;;  %s1077_s9 = smov 128  }
  0x13   : > { %s1078_s10 = smov 8   ;;  %s1079_s11 = smov [#allocation7]  }
  0x14   : > { %p750_p5 = pnand %p749_p4, %p61_p1  ;;  %s224_s12 = sshll.u32 %s1079_s11, 4  ;;  %s225_s12 = int_to_ptr.vmem [resolvable:$true] %s224_s12 }
  0x15   : > { %s208_s27 = sshll.u32 %s1370_s1, 4  ;;  %s1080_s13 = smov 16   ;;  %s209_s27 = int_to_ptr.hbm [resolvable:$true] %s208_s27 }
  0x16   : > { %752 = dma.hbm_to_vmem [thread:$0]  (!%p750_p5), %s209_s27, 1536, %s211_s30, [#allocation6], %s1077_s9, %s1077_s9, %s1078_s10  }
  0x17   : > { %s222_s8 = sshll.u32 %s1372_s2, 4  ;;  %s1081_s14 = smov 1   ;;  %s223_s8 = int_to_ptr.hbm [resolvable:$true] %s222_s8 }
  0x18   : > { %755 = dma.hbm_to_vmem [thread:$0]  (!%p750_p5), %s223_s8, 48, %s225_s12, [#allocation6], %s1080_s13, %s1080_s13, %s1081_s14  }
  0x19   : > { %s38_s15 = sadd.s32 1, %s1070_s22  ;;  %s1364_s16 = sadd.s32 4294967294, %s1074_s23  }
  0x1a   : > { %p40_p7 = scmp.ge.s32.totalorder %s38_s15, 2  ;;  %s47_s17 = sadd.s32 1, %s1062_s20 }
  0x1b   : > { %p54_p8 = scmp.ne.s32.totalorder %s1062_s20, %s1058_s19  ;;  %p55_p9 = scmp.eq.s32.totalorder %s1074_s23, 0 }
  0x1c   : > { %s1389_s15 = smov (%p40_p7, %s38_s15), 0  ;;  %p60_p10 = scmp.ne.s32.totalorder %s1058_s19, %s1054_s18 }
  0x1d   : > { %s42_s25 = ssub.s32 %s1070_s22, %s1389_s15  ;;  %p128_p11 = scmp.eq.s32.totalorder %s1148_s24, 1 }
  0x1e   : > { %p45_p12 = scmp.eq.s32.totalorder %s42_s25, 0  ;;  %p1183_p13 = por %p61_p1, %p60_p10 }
  0x1f   : > { %p1187_p0 = por %p128_p11, %p54_p8  ;;  %p134_p2 = scmp.eq.s32.totalorder %s1364_s16, 1 }
  0x20   : > { %s1194_s29 = scalar_select %p45_p12, %s1062_s20, %s47_s17  }
  0x21   : > { %p56_p4 = por %p55_p9, %p54_p8  ;;  %p1196_p5 = por %p134_p2, %p60_p10 }
  0x22   : > { %s238_s6 = sand.u32 1, %s1062_s20   ;;  %s699_s7 = sshll.u32 %s1070_s22, 3 }
  0x23   : > { %p772_p7 = scmp.lt.s32.totalorder %s1074_s23, 2  ;;  %s698_s8 = sshll.u32 %s238_s6, 3 }
  0x24   : > { %s1376_s0 = sld [smem:[#allocation17_spill]]  ;;  %s242_s13 = scalar_lea.vmem [#allocation2], %s698_s8 }
  0x25   : > { %s251_s14 = sshll.u32 %s242_s13, 4  ;;  %p757_p11 = pnand %p772_p7, %p56_p4  ;;  %s252_s14 = int_to_ptr.vmem [resolvable:$true] %s251_s14 }
  0x26   : > { %s239_s17 = scalar_lea.sflag [#allocation3], %s238_s6 }
  0x28   : > { %260 = sbr.rel (%p1156_p3) target bundleno = 353 (0x161), region = 32 }
  0x2a   : > { %s247_s11 = scalar_lea.hbm %s1376_s0, %s699_s7 }
  0x2b   : > { %s249_s12 = sshll.u32 %s247_s11, 4  ;;  %s250_s12 = int_to_ptr.hbm [resolvable:$true] %s249_s12 }
  0x2c   : > { %759 = dma.hbm_to_vmem [thread:$0]  (!%p757_p11), %s250_s12, 128, %s252_s14, %s239_s17  }
  0x2d   : > { %s1209_s25 = sand.u32 1, %s1058_s19  }
  0x2e   : > { %s701_s16 = sshll.u32 %s1209_s25, 3  ;;  %s263_s9 = scalar_lea.sflag [#allocation3], %s1209_s25 }
  0x2f   : > { %s266_s7 = scalar_lea.vmem [#allocation2], %s701_s16 }
  0x30   : > { %1037 = dma.done.wait (%p1183_p13), %s263_s9, 128  }
  0x31   : > { %1039 = vsyncadd (%p1183_p13), %s263_s9, 4294967168 }
  0x32   : > { %1041 = dma.done.wait (%p61_p1), [#allocation6], 1584  }
  0x33   : > { %1043 = vsyncadd (%p61_p1), [#allocation6], 4294965712  ;;  %v318_v0 = vld [vmem:[#allocation5 + $0x18] sm:$0xff]  ;;  %v317_v2 = vld [vmem:[#allocation5 + $0x10] sm:$0xff]  ;;  %vm323_vm0 = vcmask 261120   ;;  %s704_s28 = sshll.u32 %s1209_s25, 5 }
  0x34   : > { %v369_v1 = vld [vmem:[#allocation5 + $0x38] sm:$0xff]  ;;  %339 = vmatpush.msra.mxu0 %v318_v0  ;;  %v368_v3 = vld [vmem:[#allocation5 + $0x30] sm:$0xff]  ;;  %v316_v4 = vld [vmem:[#allocation5 + $0x8] sm:$0xff]  ;;  %vm347_vm1 = vcmask 64512   ;;  %s1222_s16 = scalar_lea.vmem [#allocation8], %s704_s28  ;;  %s1082_s26 = smov 104  }
  0x35   : > { %387 = vmatpush.msra.mxu1 %v369_v1  ;;  %v367_v5 = vld [vmem:[#allocation5 + $0x28] sm:$0xff]  ;;  %v416_v6 = vld [vmem:[#allocation5 + $0x58] sm:$0xff]  ;;  %v415_v7 = vld [vmem:[#allocation5 + $0x50] sm:$0xff]  ;;  %s1083_s6 = smov 120   ;;  %s1226_s8 = scalar_lea.vmem [#allocation9], %s704_s28 }
  0x36   : > { %340 = vmatpush.msra.mxu0 %v317_v2  ;;  %v315_v8 = vld [vmem:[#allocation5] sm:$0xff]  ;;  %434 = vmatpush.msra.mxu2 %v416_v6  ;;  %v314_v10 = vld [vmem:[%s266_s7] sm:$0xff]  ;;  %v414_v11 = vld [vmem:[#allocation5 + $0x48] sm:$0xff]  ;;  %s1084_s10 = smov 112   ;;  %s1230_s11 = scalar_lea.vmem [#allocation11], %s704_s28 }
  0x37   : > { %388 = vmatpush.msra.mxu1 %v368_v3  ;;  %v366_v9 = vld [vmem:[#allocation5 + $0x20] sm:$0xff]  ;;  %s1241_s12 = sshll.u32 %s1066_s21, 5  ;;  %s483_s13 = sshll.u32 %s1222_s16, 4  ;;  %s1258_s13 = int_to_ptr.vmem [resolvable:$true] %s483_s13 }
  0x38   : > { %341 = vmatpush.msra.mxu0 %v316_v4  ;;  %435 = vmatpush.msra.mxu2 %v415_v7  ;;  %v413_v12 = vld [vmem:[#allocation5 + $0x40] sm:$0xff]  ;;  %s500_s9 = scalar_lea.hbm %s1362_s4, %s1241_s12  ;;  %s501_s7 = sshll.u32 %s1226_s8, 4  ;;  %s502_s7 = int_to_ptr.vmem [resolvable:$true] %s501_s7 }
  0x39   : > { %389 = vmatpush.msra.mxu1 %v367_v5  ;;  %v835_v13 = vld [vmem:[#allocation7] ss:$0 sm:$0xff]  ;;  %v836_v14 = vld [vmem:[#allocation7 + $0x1] ss:$0 sm:$0xff]  ;;  %v837_v19 = vld [vmem:[#allocation7 + $0x2] ss:$0 sm:$0xff] }
  0x3a   : > { %342 = vmatpush.msra.mxu0 %v315_v8  ;;  %436 = vmatpush.msra.mxu2 %v414_v11 }
  0x3b   : > { %390 = vmatpush.msra.mxu1 %v366_v9  ;;  %707 = vmatmul.msk.f32.vlgmr.msra.gmra.mxu0 %vm323_vm0, %v314_v10 }
  0x3c   : > { %711 = vmatmul.msk.f32.vlgmr.msra.gmra.mxu1 %vm323_vm0, %v314_v10  ;;  %437 = vmatpush.msra.mxu2 %v413_v12 }
  0x3d   : > { %715 = vmatmul.msk.f32.vlgmr.msra.gmra.mxu2 %vm323_vm0, %v314_v10 }
  0xb8   : > { %v344_v15 = vpop.f32.mrf.mxu0 }
  0xb9   : > { %v392_v16 = vpop.f32.mrf.mxu1  ;;  %v345_v17 = vadd.f32 %v835_v13, %v344_v15 }
  0xba   : > { %v393_v18 = vadd.f32 %v836_v14, %v392_v16 }
  0xbb   : > { %348 = vst.msk [vmem:[%s1222_s16] sm:$0xff] %vm347_vm1, %v345_v17  ;;  %355 = vrot.lane.b32.xlu2 %v345_v17, %s1084_s10 }
  0xbc   : > { %407 = vrot.lane.b32.xlu1 %v393_v18, %s1082_s26  ;;  %397 = vrot.lane.b32.xlu0 %v393_v18, %s1083_s6  ;;  %395 = vst.msk [vmem:[%s1226_s8] sm:$0xff] %vm347_vm1, %v393_v18 }
  0xc0   : > { %v439_v20 = vpop.f32.mrf.mxu2 }
  0xc1   : > { %v440_v21 = vadd.f32 %v837_v19, %v439_v20 }
  0xc3   : > { %360 = vrot.lane.b32.xlu2 %v345_v17, %s1082_s26  ;;  %442 = vst.msk [vmem:[%s1230_s11] sm:$0xff] %vm347_vm1, %v440_v21 }
  0xc4   : > { %402 = vrot.lane.b32.xlu0 %v393_v18, %s1084_s10  ;;  %350 = vrot.lane.b32.xlu1 %v345_v17, %s1083_s6 }
  0xcb   : > { %454 = vrot.lane.b32.xlu2 %v440_v21, %s1082_s26  ;;  %s482_s26 = scalar_lea.hbm %s1361_s3, %s1241_s12 }
  0xcc   : > { %444 = vrot.lane.b32.xlu0 %v440_v21, %s1083_s6  ;;  %449 = vrot.lane.b32.xlu1 %v440_v21, %s1084_s10  ;;  %s464_s6 = sand.u32 1, %s1148_s24   ;;  %s1260_s10 = sshll.u32 %s500_s9, 4  ;;  %s504_s10 = int_to_ptr.hbm [resolvable:$true] %s1260_s10 }
  0xcd   : > { %s1262_s0 = sshll.u32 %s482_s26, 4  ;;  %s1274_s28 = scalar_lea.sflag [#allocation10], %s464_s6 }
  0xce   : > { %1377 = sst [smem:[#allocation16_spill]] %s1262_s0  ;;  %s942_s9 = sshra.s32 %s504_s10, 4  ;;  %s943_s9 = int_to_ptr.hbm [resolvable:$true] %s942_s9 }
  0xcf   : > { %s944_s21 = scalar_lea.hbm %s943_s9, 32  ;;  %p949_p9 = scmp.lt.s32.totalorder %s943_s9, %s1362_s4 }
  0xd0   : > { %p945_p1 = scmp.ne.s32.totalorder %s943_s9, %s944_s21 }
  0xd2   : > { %p946_p3 = pnand %p945_p1, %p1187_p0 }
  0xd4   : > { %p947_p8 = pneg %p946_p3 }
 0x115   : > { %v356_v22 = vpop.permute.xlu2 %355 }
 0x116   : > { %709 = vst.msk [vmem:[%s1222_s16 + $0x10] sm:$0xff] %vm347_vm1, %v356_v22 }
 0x11d   : > { %v361_v23 = vpop.permute.xlu2 %360 }
 0x11e   : > { %710 = vst.msk [vmem:[%s1222_s16 + $0x18] sm:$0xff] %vm347_vm1, %v361_v23 }
 0x125   : > { %v455_v24 = vpop.permute.xlu2 %454 }
 0x126   : > { %718 = vst.msk [vmem:[%s1230_s11 + $0x18] sm:$0xff] %vm347_vm1, %v455_v24 }
 0x12e   : > { %v408_v25 = vpop.permute.xlu1 %407  ;;  %v398_v26 = vpop.permute.xlu0 %397 }
 0x12f   : > { %714 = vst.msk [vmem:[%s1226_s8 + $0x18] sm:$0xff] %vm347_vm1, %v408_v25 }
 0x130   : > { %712 = vst.msk [vmem:[%s1226_s8 + $0x8] sm:$0xff] %vm347_vm1, %v398_v26 }
 0x136   : > { %v403_v27 = vpop.permute.xlu0 %402  ;;  %v351_v28 = vpop.permute.xlu1 %350 }
 0x137   : > { %713 = vst.msk [vmem:[%s1226_s8 + $0x10] sm:$0xff] %vm347_vm1, %v403_v27  ;;  %s948_s8 = scalar_lea.hbm %s1362_s4, 64 }
 0x138   : > { %708 = vst.msk [vmem:[%s1222_s16 + $0x8] sm:$0xff] %vm347_vm1, %v351_v28  ;;  %p950_p10 = scmp.lt.s32.totalorder %s948_s8, %s944_s21 }
 0x13a   : > { %p951_p12 = por %p950_p10, %p949_p9 }
 0x13c   : > { %p952_p13 = pnand %p951_p12, %p947_p8 }
 0x13e   : > { %955 = shalt.err (!%p952_p13)
}
 0x13f   : > { %s1085_s16 = smov 128   ;;  %s1378_s6 = sld [smem:[#allocation16_spill]] }
 0x140   : > { %s1086_s14 = smov 8   ;;  %s460_s1 = scalar_lea.sflag [#allocation4], %s1209_s25 }
 0x141   : > { %744 = dma.vmem_to_hbm [thread:$0]  (%p1187_p0), %s502_s7, 512, %s504_s10, %s1274_s28, %s1085_s16, %s1085_s16, %s1086_s14  }
 0x142   : > { %s976_s26 = scalar_lea.hbm %s1361_s3, 64 }
 0x145   : > { %s1379_s24 = int_to_ptr.hbm [resolvable:$true] %s1378_s6 }
 0x146   : > { %s970_s0 = sshra.s32 %s1379_s24, 4  ;;  %s971_s0 = int_to_ptr.hbm [resolvable:$true] %s970_s0 }
 0x147   : > { %s972_s2 = scalar_lea.hbm %s971_s0, 32  ;;  %p977_p11 = scmp.lt.s32.totalorder %s971_s0, %s1361_s3 }
 0x148   : > { %p973_p2 = scmp.ne.s32.totalorder %s971_s0, %s972_s2  ;;  %p978_p1 = scmp.lt.s32.totalorder %s976_s26, %s972_s2 }
 0x14a   : > { %p974_p4 = pnand %p973_p2, %p1187_p0  ;;  %p979_p3 = por %p978_p1, %p977_p11 }
 0x14c   : > { %p975_p7 = pneg %p974_p4 }
 0x14e   : > { %p980_p8 = pnand %p979_p3, %p975_p7 }
 0x150   : > { %983 = shalt.err (!%p980_p8)
}
 0x151   : > { %s1380_s25 = smov %s1379_s24  ;;  %s519_s7 = sshll.u32 %s1230_s11, 4  ;;  %v445_v29 = vpop.permute.xlu0 %444  ;;  %v450_v30 = vpop.permute.xlu1 %449  ;;  %s520_s7 = int_to_ptr.vmem [resolvable:$true] %s519_s7 }
 0x152   : > { %743 = dma.vmem_to_hbm [thread:$0]  (%p1187_p0), %s1258_s13, 512, %s1380_s25, %s460_s1, %s1085_s16, %s1085_s16, %s1086_s14  }
 0x153   : > { %s1381_s24 = scalar_lea.hbm %s1363_s5, %s1241_s12  ;;  %716 = vst.msk [vmem:[%s1230_s11 + $0x8] sm:$0xff] %vm347_vm1, %v445_v29  ;;  %s1004_s12 = scalar_lea.hbm %s1363_s5, 64 }
 0x154   : > { %s521_s0 = sshll.u32 %s1381_s24, 4  ;;  %717 = vst.msk [vmem:[%s1230_s11 + $0x10] sm:$0xff] %vm347_vm1, %v450_v30  ;;  %s522_s0 = int_to_ptr.hbm [resolvable:$true] %s521_s0 }
 0x155   : > { %s998_s6 = sshra.s32 %s522_s0, 4  ;;  %s999_s6 = int_to_ptr.hbm [resolvable:$true] %s998_s6 }
 0x156   : > { %s1000_s2 = scalar_lea.hbm %s999_s6, 32  ;;  %p1005_p13 = scmp.lt.s32.totalorder %s999_s6, %s1363_s5 }
 0x157   : > { %p1001_p9 = scmp.ne.s32.totalorder %s999_s6, %s1000_s2  ;;  %p1006_p2 = scmp.lt.s32.totalorder %s1004_s12, %s1000_s2 }
 0x159   : > { %p1002_p10 = pnand %p1001_p9, %p1187_p0  ;;  %p1007_p4 = por %p1006_p2, %p1005_p13 }
 0x15b   : > { %p1003_p12 = pneg %p1002_p10 }
 0x15d   : > { %p1008_p7 = pnand %p1007_p4, %p1003_p12 }
 0x15f   : > { %1011 = shalt.err (!%p1008_p7)
}
 0x160   : > { %745 = dma.vmem_to_hbm [thread:$0]  (%p1187_p0), %s520_s7, 512, %s522_s0, %s1274_s28, %s1085_s16, %s1085_s16, %s1086_s14  }
 0x161 PF: > { %s536_s11 = sand.u32 1, %s1054_s18   ;;  %p761_p11 = pnand %p697_p6, %p1196_p5 }
 0x162   : > { %s537_s26 = scalar_lea.sflag [#allocation4], %s536_s11 }
 0x163   : > { %p762_p1 = pneg %p761_p11 }
 0x165   : > { %1045 = dma.done.wait (%p762_p1), %s537_s26, 512  }
 0x166   : > { %1047 = vsyncadd (%p762_p1), %s537_s26, 4294966784  ;;  %s1382_s8 = sadd.s32 4294967294, %s1074_s23  }
 0x167   : > { %s546_s27 = sand.u32 1, %s1382_s8  }
 0x168   : > { %s547_s25 = scalar_lea.sflag [#allocation10], %s546_s27 }
 0x169   : > { %1049 = dma.done.wait (%p762_p1), %s547_s25, 1024  }
 0x16a   : > { %1051 = vsyncadd (%p762_p1), %s547_s25, 4294966272  ;;  %s26_s23 = sadd.s32 1, %s1074_s23   ;;  %s1383_s18 = smov %s1058_s19 }
 0x16b   : > { %p23_p0 = scmp.ge.s32.totalorder %s26_s23, 4   ;;  %s1384_s19 = smov %s1062_s20 }
 0x16c   : > { %s1385_s20 = smov %s1194_s29  ;;  %s1386_s21 = smov %s1070_s22 }
 0x16d   : > { %s1387_s22 = smov %s1389_s15  ;;  %25 = sbr.rel (!%p23_p0) target bundleno = 13 (0xd), region = 130 }
 0x172   :  { %563 = vsyncpa [#allocation3], 1 }
 0x173   :  { %565 = vsyncpa [#allocation3 + $0x1], 1 }
 0x174   :  { %566 = vsyncpa [#allocation6], 1 }
 0x175   :  { %567 = vsyncpa [#allocation4], 1 }
 0x176   :  { %569 = vsyncpa [#allocation4 + $0x1], 1 }
 0x177   :  { %570 = vsyncpa [#allocation10], 1 }
 0x178   :  { %572 = vsyncpa [#allocation10 + $0x1], 1 }

</bundles_post_ra>
